<compile_context>
chip_gen: v7x
topology: tpu7x:2x2x1
jax: 0.10.0
libtpu: 0.0.40
codegen_flags: <defaults>
</compile_context>

<pallas_src>
import jax
import jax.numpy as jnp
from jax.experimental import pallas as pl
from jax.experimental.pallas import tpu as pltpu


_LANES = 128  # TPU lane width (last dim of every block)


def _l1_partial_kernel(ei_ref, wi_ref, out_ref):
    # Block shapes: ei_ref/wi_ref -> (block_rows, 128), out_ref -> (1, 128).
    # Upcast on load (in-register) so bf16 inputs stay bf16 in HBM/VMEM.
    diff = jnp.abs(
        ei_ref[...].astype(jnp.float32) - wi_ref[...].astype(jnp.float32)
    )
    # Per-block partial sum, kept lane-dense (1, 128); VPU adds across vregs
    # plus a single cross-sublane reduce per multi-MiB block.
    out_ref[...] = jnp.sum(diff, axis=0, keepdims=True)


def match_loss(ei, wi, *, batch_size, latent_size, block_rows=8192):
    """Mean L1 loss between ei and wi, each viewed as (batch_size, latent_size)."""
    n = batch_size * latent_size

    # Row-major flatten == torch .view element order.
    ei_flat = ei.reshape(-1)
    wi_flat = wi.reshape(-1)
    assert ei_flat.size == n and wi_flat.size == n, "inputs must have batch*latent elements"

    # Lane-dense layout: rows of 128 lanes, rows rounded up to a multiple of 8.
    rows = -(-n // _LANES)                 # ceil(n / 128)
    rows = max(8, -(-rows // 8) * 8)       # multiple of 8 sublanes

    # Block size: multiple of 8 rows, capped at the requested block_rows
    # (default 8192 rows -> 4 MiB f32 per input per pipeline buffer).
    block_rows = max(8, -(-min(block_rows, rows) // 8) * 8)
    num_blocks = -(-rows // block_rows)
    padded_rows = num_blocks * block_rows
    padded_n = padded_rows * _LANES

    pad = padded_n - n
    if pad:
        ei_flat = jnp.pad(ei_flat, (0, pad))
        wi_flat = jnp.pad(wi_flat, (0, pad))
    ei2 = ei_flat.reshape(padded_rows, _LANES)
    wi2 = wi_flat.reshape(padded_rows, _LANES)

    partials = pl.pallas_call(
        _l1_partial_kernel,
        out_shape=jax.ShapeDtypeStruct((num_blocks, _LANES), jnp.float32),
        grid_spec=pltpu.PrefetchScalarGridSpec(
            num_scalar_prefetch=0,
            grid=(num_blocks,),
            in_specs=[
                pl.BlockSpec((block_rows, _LANES), lambda b: (b, 0)),
                pl.BlockSpec((block_rows, _LANES), lambda b: (b, 0)),
            ],
            out_specs=pl.BlockSpec((1, _LANES), lambda b: (b, 0)),
        ),
        compiler_params=pltpu.CompilerParams(
            # Independent per-block partials -> megacore can split the grid.
            dimension_semantics=("parallel",),
        ),
    )(ei2, wi2)

    # Tiny final reduction + mean scaling outside the kernel.
    return jnp.sum(partials) * (1.0 / float(n))


if __name__ == "__main__":
    # Small shapes consistent with the module: ei/Wi come in as feature maps
    # that get .view()'d into (BATCH_SIZE, LATENT_SIZE).
    BATCH_SIZE = 2
    C, H, W = 4, 8, 8
    LATENT_SIZE = C * H * W  # 256

    key = jax.random.PRNGKey(0)
    k_ei, k_wi = jax.random.split(key)
    ei = jax.random.normal(k_ei, (BATCH_SIZE, C, H, W), dtype=jnp.float32)
    Wi = jax.random.normal(k_wi, (BATCH_SIZE, C, H, W), dtype=jnp.float32)

    loss = match_loss(ei, Wi, batch_size=BATCH_SIZE, latent_size=LATENT_SIZE)
    loss = jax.block_until_ready(loss)

    # Pure-JAX reference check.
    ref = jnp.mean(
        jnp.abs(
            ei.reshape(BATCH_SIZE, LATENT_SIZE)
            - Wi.reshape(BATCH_SIZE, LATENT_SIZE)
        )
    )
    assert jnp.allclose(loss, ref, rtol=1e-6, atol=1e-6), (loss, ref)

    print("KERNEL_OK")
</pallas_src>

<mosaic_0001>
module attributes {stable_mosaic.version = 11 : i64} {
  func.func @_l1_partial_kernel(%arg0: i32, %arg1: memref<8x128xf32, #tpu.memory_space<vmem>>, %arg2: memref<8x128xf32, #tpu.memory_space<vmem>>, %arg3: memref<1x128xf32, #tpu.memory_space<vmem>>) attributes {dimension_semantics = [#tpu.dimension_semantics<parallel>], iteration_bounds = array<i64: 1>, scalar_prefetch = 0 : i64, scratch_operands = 0 : i64, tpu.core_type = #tpu.core_type<tc>, window_params = [{transform_indices = @transform_0, window_bounds = array<i64: 8, 128>}, {transform_indices = @transform_1, window_bounds = array<i64: 8, 128>}, {transform_indices = @transform_2, window_bounds = array<i64: 1, 128>}]} {
    %c0 = arith.constant 0 : index
    %c0_0 = arith.constant 0 : index
    %0 = vector.load %arg1[%c0, %c0_0] : memref<8x128xf32, #tpu.memory_space<vmem>>, vector<8x128xf32>
    %c0_1 = arith.constant 0 : index
    %c0_2 = arith.constant 0 : index
    %1 = vector.load %arg2[%c0_1, %c0_2] : memref<8x128xf32, #tpu.memory_space<vmem>>, vector<8x128xf32>
    %2 = arith.subf %0, %1 : vector<8x128xf32>
    %3 = math.absf %2 : vector<8x128xf32>
    %cst = arith.constant dense<0.000000e+00> : vector<128xf32>
    %4 = vector.multi_reduction <add>, %3, %cst [0] : vector<8x128xf32> to vector<128xf32>
    %5 = vector.shape_cast %4 : vector<128xf32> to vector<1x128xf32>
    %c0_3 = arith.constant 0 : index
    %c0_4 = arith.constant 0 : index
    %6 = vector.load %arg3[%c0_3, %c0_4] : memref<1x128xf32, #tpu.memory_space<vmem>>, vector<1x128xf32>
    tpu.vector_store %arg3[%c0_3, %c0_4], %5 {strides = array<i32>} : memref<1x128xf32, #tpu.memory_space<vmem>>, vector<1x128xf32>,
    return
  }
  func.func @transform_0(%arg0: i32) -> (i32, i32) {
    %c0_i32 = arith.constant 0 : i32
    %c0_i32_0 = arith.constant 0 : i32
    return %arg0, %c0_i32 : i32, i32
  }
  func.func @transform_1(%arg0: i32) -> (i32, i32) {
    %c0_i32 = arith.constant 0 : i32
    %c0_i32_0 = arith.constant 0 : i32
    return %arg0, %c0_i32 : i32, i32
  }
  func.func @transform_2(%arg0: i32) -> (i32, i32) {
    %c0_i32 = arith.constant 0 : i32
    %c0_i32_0 = arith.constant 0 : i32
    return %arg0, %c0_i32 : i32, i32
  }
}

</mosaic_0001>

<bundles_post_ra>
// kernel: tpu_custom_call.1
= control target key start
LH: loop header
LB: loop body
LE: loop exit
PB: predicated region body
PF: predicated region fallthrough
CT: control target
= control target key end

     0   :  { %7 = vsyncpa [#allocation3], 0  ;;  %s192_s0 = inlined_call_operand.hbm [shape: f32[8,128], index: 0, kind: input, shape index: {}]   ;;  %s193_s1 = inlined_call_operand.hbm [shape: f32[8,128], index: 1, kind: input, shape index: {}]   ;;  %s194_s2 = inlined_call_operand.hbm [shape: f32[1,128], index: 2, kind: output, shape index: {}]  }
   0x1   :  { %8 = vsyncpa [#allocation6], 0 }
   0x2   :  { %9 = vsyncpa [#allocation4], 0  ;;  %s138_s9 = smov [#allocation2]   ;;  %s139_s11 = smov [#allocation5]  }
   0x3   :  { %s16_s10 = sshll.u32 %s138_s9, 4  ;;  %s26_s12 = sshll.u32 %s139_s11, 4  ;;  %s17_s10 = int_to_ptr.vmem [resolvable:$true] %s16_s10  ;;  %s27_s12 = int_to_ptr.vmem [resolvable:$true] %s26_s12 }
   0x4   :  { %s66_s15 = scalar_lea.hbm %s192_s0, 128 }
   0x5   :  { %p67_p0 = scmp.ne.s32.totalorder %s192_s0, %s66_s15  ;;  %p70_p1 = scmp.lt.u32.totalorder %s66_s15, %s192_s0 }
   0x7   :  { %p72_p2 = pnand %p70_p1, %p67_p0 }
   0x9   :  { %75 = shalt.err (!%p72_p2)
}
   0xa   :  { %s76_s20 = scalar_lea.vmem %s17_s10, 128  ;;  %p81_p4 = scmp.lt.s32.totalorder %s17_s10, %s17_s10 }
   0xb   :  { %p77_p3 = scmp.ne.s32.totalorder %s17_s10, %s76_s20  ;;  %p82_p5 = scmp.lt.s32.totalorder %s76_s20, %s76_s20 }
   0xd   :  { %p83_p6 = por %p82_p5, %p81_p4 }
   0xf   :  { %p84_p7 = pnand %p83_p6, %p77_p3 }
  0x11   :  { %87 = shalt.err (!%p84_p7)
}
  0x12   :  { %19 = dma.hbm_to_vmem [thread:$0]  %s192_s0, 128, %s17_s10, [#allocation3]  }
  0x13   :  { %s88_s25 = scalar_lea.hbm %s193_s1, 128 }
  0x14   :  { %p89_p8 = scmp.ne.s32.totalorder %s193_s1, %s88_s25  ;;  %p92_p9 = scmp.lt.u32.totalorder %s88_s25, %s193_s1 }
  0x16   :  { %p94_p10 = pnand %p92_p9, %p89_p8 }
  0x18   :  { %97 = shalt.err (!%p94_p10)
}
  0x19   :  { %s98_s30 = scalar_lea.vmem %s27_s12, 128  ;;  %p103_p12 = scmp.lt.s32.totalorder %s27_s12, %s27_s12 }
  0x1a   :  { %p99_p11 = scmp.ne.s32.totalorder %s27_s12, %s98_s30  ;;  %p104_p13 = scmp.lt.s32.totalorder %s98_s30, %s98_s30 }
  0x1c   :  { %p105_p0 = por %p104_p13, %p103_p12 }
  0x1e   :  { %p106_p1 = pnand %p105_p0, %p99_p11 }
  0x20   :  { %109 = shalt.err (!%p106_p1)
}
  0x21   :  { %29 = dma.hbm_to_vmem [thread:$0]  %s193_s1, 128, %s27_s12, [#allocation6]  }
  0x22   :  { %132 = dma.done.wait [#allocation3], 128  }
  0x23   :  { %133 = vsyncadd [#allocation3], 4294967168 }
  0x24   :  { %134 = dma.done.wait [#allocation6], 128  }
  0x25   :  { %135 = vsyncadd [#allocation6], 4294967168  ;;  %v36_v0 = vld [vmem:[#allocation2] sm:$0xff]  ;;  %v37_v1 = vld [vmem:[#allocation5] sm:$0xff]  ;;  %s140_s4 = smov [#allocation7]  }
  0x26   :  { %v38_v2 = vsub.f32 %v36_v0, %v37_v1  ;;  %s53_s5 = sshll.u32 %s140_s4, 4  ;;  %s54_s5 = int_to_ptr.vmem [resolvable:$true] %s53_s5 }
  0x27   :  { %s110_s6 = scalar_lea.vmem %s54_s5, 16  ;;  %s114_s1 = scalar_lea.vmem %s54_s5, 32 }
  0x28   :  { %v39_v3 = vand.u32 2147483647, %v38_v2  ;;  %p111_p2 = scmp.ne.s32.totalorder %s54_s5, %s110_s6  ;;  %p115_p3 = scmp.lt.s32.totalorder %s54_s5, %s54_s5 }
  0x29   :  { %p116_p4 = scmp.lt.s32.totalorder %s114_s1, %s110_s6 }
  0x2a   :  { %v40_v4 = vrot.slane %v39_v3, 4 }
  0x2b   :  { %p117_p5 = por %p116_p4, %p115_p3 }
  0x2c   :  { %v41_v5 = vadd.f32 %v40_v4, %v39_v3 }
  0x2d   :  { %p118_p6 = pnand %p117_p5, %p111_p2 }
  0x2e   :  { %v42_v6 = vrot.slane %v41_v5, 2 }
  0x30   :  { %v43_v7 = vadd.f32 %v42_v6, %v41_v5 }
  0x32   :  { %v44_v8 = vrot.slane %v43_v7, 1 }
  0x34   :  { %v45_v9 = vadd.f32 %v44_v8, %v43_v7 }
  0x36   :  { %46 = vst [vmem:[#allocation7] sm:$0x1] %v45_v9 }
  0x37   :  { %121 = shalt.err (!%p118_p6)
}
  0x38   :  { %s122_s9 = scalar_lea.hbm %s194_s2, 16 }
  0x39   :  { %p123_p7 = scmp.ne.s32.totalorder %s194_s2, %s122_s9  ;;  %p126_p8 = scmp.lt.u32.totalorder %s122_s9, %s194_s2 }
  0x3b   :  { %p128_p9 = pnand %p126_p8, %p123_p7 }
  0x3d   :  { %131 = shalt.err (!%p128_p9)
}
  0x3e   :  { %56 = dma.vmem_to_hbm [thread:$0]  %s54_s5, 16, %s194_s2, [#allocation4]  }
  0x3f   :  { %136 = dma.done.wait [#allocation4], 16  }
  0x40   :  { %137 = vsyncadd [#allocation4], 4294967280 }
  0x41   :  { %60 = vsyncpa [#allocation3], 1 }
  0x42   :  { %61 = vsyncpa [#allocation6], 1 }
  0x43   :  { %62 = vsyncpa [#allocation4], 1 }

</bundles_post_ra>
